<compile_context>
chip_gen: v5e
topology: v5e:2x2
jax: 0.10.0
libtpu: 0.0.40
codegen_flags: <defaults>
</compile_context>

<pallas_src>
import functools

import jax
import jax.numpy as jnp
from jax.experimental import pallas as pl
from jax.experimental.pallas import tpu as pltpu

IN_RAW = 6 * 6 * 3   # 108
IN_PAD = 128
H1, H2, H3 = 128, 64, 32
OUT_RAW = 2
OUT_PAD = 128


def _round_up(n, m):
    return (n + m - 1) // m * m


def _mlp_kernel(x_ref,
                w1_ref, b1_ref,
                w2_ref, b2_ref,
                w3_ref, b3_ref,
                w4_ref, b4_ref,
                o_ref):
    # Layer 1: Linear(108->128) (input pre-padded to 128 lanes with zeros),
    # Dropout (eval mode: identity), ReLU.  bf16 operands, f32 accumulation.
    h = jnp.dot(x_ref[...], w1_ref[...], preferred_element_type=jnp.float32)
    h = jnp.maximum(h + b1_ref[...], 0.0)
    # Layer 2: Linear(128->64), ReLU
    h = jnp.dot(h.astype(jnp.bfloat16), w2_ref[...],
                preferred_element_type=jnp.float32)
    h = jnp.maximum(h + b2_ref[...], 0.0)
    # Layer 3: Linear(64->32), ReLU
    h = jnp.dot(h.astype(jnp.bfloat16), w3_ref[...],
                preferred_element_type=jnp.float32)
    h = jnp.maximum(h + b3_ref[...], 0.0)
    # Layer 4: Linear(32->2), columns lane-padded to 128 for an unmasked store
    out = jnp.dot(h.astype(jnp.bfloat16), w4_ref[...],
                  preferred_element_type=jnp.float32)
    o_ref[...] = (out + b4_ref[...]).astype(o_ref.dtype)


@functools.partial(jax.jit, static_argnames=("tb",))
def net_forward(x_nchw, params, *, tb=512):
    """x_nchw: (B, 3, 6, 6) float32.  Returns (B, 2) float32."""
    B = x_nchw.shape[0]
    # torch.flatten(x, 1, -1): row-major over (C, H, W)
    xflat = x_nchw.reshape(B, -1)                         # (B, 108)
    xpad = jnp.pad(xflat, ((0, 0), (0, IN_PAD - IN_RAW)))  # lane pad 108 -> 128

    # Tile size: clamp to the (sublane-rounded) batch so tiny demo batches
    # don't allocate a huge block; pad B to a multiple of the tile.
    tb = min(tb, _round_up(B, 8))
    b_pad = _round_up(B, tb)
    if b_pad != B:
        xpad = jnp.pad(xpad, ((0, b_pad - B), (0, 0)))
    xpad = xpad.astype(jnp.bfloat16)

    (w1, b1), (w2, b2), (w3, b3), (w4, b4) = params
    # Zero-pad w1 rows (feature pad contributes nothing) and layer-4 columns
    # (lane-dense output); cast matmul operands to bf16, keep biases f32.
    w1p = jnp.pad(w1, ((0, IN_PAD - IN_RAW), (0, 0))).astype(jnp.bfloat16)
    w2c = w2.astype(jnp.bfloat16)
    w3c = w3.astype(jnp.bfloat16)
    w4p = jnp.pad(w4, ((0, 0), (0, OUT_PAD - OUT_RAW))).astype(jnp.bfloat16)
    b4p = jnp.pad(b4, ((0, 0), (0, OUT_PAD - OUT_RAW)))

    grid = (b_pad // tb,)

    def resident(shape):
        # Weights / biases: same block every grid step -> stay VMEM-resident.
        return pl.BlockSpec(shape, lambda i: (0, 0))

    in_specs = [
        pl.BlockSpec((tb, IN_PAD), lambda i: (i, 0)),   # streamed x tiles
        resident((IN_PAD, H1)), resident((1, H1)),
        resident((H1, H2)),     resident((1, H2)),
        resident((H2, H3)),     resident((1, H3)),
        resident((H3, OUT_PAD)), resident((1, OUT_PAD)),
    ]
    out_specs = pl.BlockSpec((tb, OUT_PAD), lambda i: (i, 0))

    weight_elems = IN_PAD * H1 + H1 * H2 + H2 * H3 + H3 * OUT_PAD
    flops = 2 * b_pad * weight_elems
    bytes_accessed = (b_pad * IN_PAD * 2            # bf16 x stream
                      + b_pad * OUT_PAD * 4         # f32 output
                      + weight_elems * 2            # bf16 weights
                      + (H1 + H2 + H3 + OUT_PAD) * 4)  # f32 biases

    out = pl.pallas_call(
        _mlp_kernel,
        out_shape=jax.ShapeDtypeStruct((b_pad, OUT_PAD), jnp.float32),
        grid=grid,
        in_specs=in_specs,
        out_specs=out_specs,
        compiler_params=pltpu.CompilerParams(
            dimension_semantics=("parallel",)),
        cost_estimate=pl.CostEstimate(flops=flops,
                                      transcendentals=0,
                                      bytes_accessed=bytes_accessed),
    )(xpad, w1p, b1, w2c, b2, w3c, b3, w4p, b4p)

    return out[:B, :OUT_RAW]


def init_params(key):
    """Deterministic init mirroring PyTorch nn.Linear default
    (uniform[-1/sqrt(fan_in), 1/sqrt(fan_in)]).  Weights stored as (in, out),
    i.e. the transpose of PyTorch's (out, in) layout."""
    dims = [(IN_RAW, H1), (H1, H2), (H2, H3), (H3, OUT_RAW)]
    params = []
    for (fan_in, fan_out) in dims:
        key, kw, kb = jax.random.split(key, 3)
        bound = 1.0 / jnp.sqrt(jnp.float32(fan_in))
        w = jax.random.uniform(kw, (fan_in, fan_out), jnp.float32, -bound, bound)
        b = jax.random.uniform(kb, (1, fan_out), jnp.float32, -bound, bound)
        params.append((w, b))
    return params


def net_forward_ref_f32(x_nchw, params):
    """Plain-JAX full-f32 reference (exact PyTorch semantics, eval mode)."""
    B = x_nchw.shape[0]
    h = x_nchw.reshape(B, -1)
    (w1, b1), (w2, b2), (w3, b3), (w4, b4) = params
    h = jnp.maximum(h @ w1 + b1, 0.0)   # dropout (eval) is identity
    h = jnp.maximum(h @ w2 + b2, 0.0)
    h = jnp.maximum(h @ w3 + b3, 0.0)
    return h @ w4 + b4


def net_forward_ref_mixed(x_nchw, params):
    """Plain-JAX reference with the same bf16-operand / f32-accumulate
    precision as the kernel (tight-tolerance check)."""
    B = x_nchw.shape[0]
    h = x_nchw.reshape(B, -1)

    def lin(a, w, b):
        return jnp.dot(a.astype(jnp.bfloat16), w.astype(jnp.bfloat16),
                       preferred_element_type=jnp.float32) + b

    (w1, b1), (w2, b2), (w3, b3), (w4, b4) = params
    h = jnp.maximum(lin(h, w1, b1), 0.0)
    h = jnp.maximum(lin(h, w2, b2), 0.0)
    h = jnp.maximum(lin(h, w3, b3), 0.0)
    return lin(h, w4, b4)


if __name__ == "__main__":
    key = jax.random.PRNGKey(0)
    key, kx = jax.random.split(key)

    # Input consistent with the flattened feature size 6*6*3 = 108.
    # B=40 with tile tb=16 -> batch padded to 48, grid of 3 steps
    # (exercises tiling, pipelining and the pad/slice path).
    B = 40
    x = jax.random.normal(kx, (B, 3, 6, 6), dtype=jnp.float32)

    params = init_params(key)

    out = net_forward(x, params, tb=16)
    out = jax.block_until_ready(out)
    assert out.shape == (B, OUT_RAW), out.shape

    ref_mixed = net_forward_ref_mixed(x, params)
    ref_f32 = net_forward_ref_f32(x, params)
    assert jnp.allclose(out, ref_mixed, atol=2e-3, rtol=2e-3), \
        "mismatch vs matched-precision reference"
    assert jnp.allclose(out, ref_f32, atol=5e-2, rtol=5e-2), \
        "mismatch vs f32 reference"

    print("KERNEL_OK")
</pallas_src>

<mosaic_0001>
module attributes {stable_mosaic.version = 11 : i64} {
  func.func @_mlp_kernel(%arg0: i32, %arg1: memref<16x128xbf16, #tpu.memory_space<vmem>>, %arg2: memref<128x128xbf16, #tpu.memory_space<vmem>>, %arg3: memref<1x128xf32, #tpu.memory_space<vmem>>, %arg4: memref<128x64xbf16, #tpu.memory_space<vmem>>, %arg5: memref<1x64xf32, #tpu.memory_space<vmem>>, %arg6: memref<64x32xbf16, #tpu.memory_space<vmem>>, %arg7: memref<1x32xf32, #tpu.memory_space<vmem>>, %arg8: memref<32x128xbf16, #tpu.memory_space<vmem>>, %arg9: memref<1x128xf32, #tpu.memory_space<vmem>>, %arg10: memref<16x128xf32, #tpu.memory_space<vmem>>) attributes {dimension_semantics = [#tpu.dimension_semantics<parallel>], iteration_bounds = array<i64: 3>, scalar_prefetch = 0 : i64, scratch_operands = 0 : i64, tpu.core_type = #tpu.core_type<tc>, window_params = [{transform_indices = @transform_0, window_bounds = array<i64: 16, 128>}, {pipeline_mode = #tpu.pipeline_mode<synchronous>, transform_indices = @transform_1, window_bounds = array<i64: 128, 128>}, {pipeline_mode = #tpu.pipeline_mode<synchronous>, transform_indices = @transform_2, window_bounds = array<i64: 1, 128>}, {pipeline_mode = #tpu.pipeline_mode<synchronous>, transform_indices = @transform_3, window_bounds = array<i64: 128, 64>}, {pipeline_mode = #tpu.pipeline_mode<synchronous>, transform_indices = @transform_4, window_bounds = array<i64: 1, 64>}, {pipeline_mode = #tpu.pipeline_mode<synchronous>, transform_indices = @transform_5, window_bounds = array<i64: 64, 32>}, {pipeline_mode = #tpu.pipeline_mode<synchronous>, transform_indices = @transform_6, window_bounds = array<i64: 1, 32>}, {pipeline_mode = #tpu.pipeline_mode<synchronous>, transform_indices = @transform_7, window_bounds = array<i64: 32, 128>}, {pipeline_mode = #tpu.pipeline_mode<synchronous>, transform_indices = @transform_8, window_bounds = array<i64: 1, 128>}, {transform_indices = @transform_9, window_bounds = array<i64: 16, 128>}]} {
    %c0 = arith.constant 0 : index
    %c0_0 = arith.constant 0 : index
    %0 = vector.load %arg1[%c0, %c0_0] : memref<16x128xbf16, #tpu.memory_space<vmem>>, vector<16x128xbf16>
    %c0_1 = arith.constant 0 : index
    %c0_2 = arith.constant 0 : index
    %1 = vector.load %arg2[%c0_1, %c0_2] : memref<128x128xbf16, #tpu.memory_space<vmem>>, vector<128x128xbf16>
    %cst = arith.constant dense<0.000000e+00> : vector<16x128xf32>
    %2 = tpu.matmul %0, %1, %cst {dimension_numbers = #tpu.dot_dimension_numbers<[1], [0], [0], [1], [0, 0, 1, 1], [], []>} : vector<16x128xbf16>, vector<128x128xbf16>, vector<16x128xf32> -> vector<16x128xf32>
    %c0_3 = arith.constant 0 : index
    %c0_4 = arith.constant 0 : index
    %3 = vector.load %arg3[%c0_3, %c0_4] : memref<1x128xf32, #tpu.memory_space<vmem>>, vector<1x128xf32>
    %4 = vector.broadcast %3 : vector<1x128xf32> to vector<16x128xf32>
    %5 = arith.addf %2, %4 : vector<16x128xf32>
    %cst_5 = arith.constant 0.000000e+00 : f32
    %6 = vector.broadcast %cst_5 : f32 to vector<16x128xf32>
    %7 = arith.maximumf %5, %6 : vector<16x128xf32>
    %8 = arith.truncf %7 : vector<16x128xf32> to vector<16x128xbf16>
    %c0_6 = arith.constant 0 : index
    %c0_7 = arith.constant 0 : index
    %9 = vector.load %arg4[%c0_6, %c0_7] : memref<128x64xbf16, #tpu.memory_space<vmem>>, vector<128x64xbf16>
    %cst_8 = arith.constant dense<0.000000e+00> : vector<16x64xf32>
    %10 = tpu.matmul %8, %9, %cst_8 {dimension_numbers = #tpu.dot_dimension_numbers<[1], [0], [0], [1], [0, 0, 1, 1], [], []>} : vector<16x128xbf16>, vector<128x64xbf16>, vector<16x64xf32> -> vector<16x64xf32>
    %c0_9 = arith.constant 0 : index
    %c0_10 = arith.constant 0 : index
    %11 = vector.load %arg5[%c0_9, %c0_10] : memref<1x64xf32, #tpu.memory_space<vmem>>, vector<1x64xf32>
    %12 = vector.broadcast %11 : vector<1x64xf32> to vector<16x64xf32>
    %13 = arith.addf %10, %12 : vector<16x64xf32>
    %cst_11 = arith.constant 0.000000e+00 : f32
    %14 = vector.broadcast %cst_11 : f32 to vector<16x64xf32>
    %15 = arith.maximumf %13, %14 : vector<16x64xf32>
    %16 = arith.truncf %15 : vector<16x64xf32> to vector<16x64xbf16>
    %c0_12 = arith.constant 0 : index
    %c0_13 = arith.constant 0 : index
    %17 = vector.load %arg6[%c0_12, %c0_13] : memref<64x32xbf16, #tpu.memory_space<vmem>>, vector<64x32xbf16>
    %cst_14 = arith.constant dense<0.000000e+00> : vector<16x32xf32>
    %18 = tpu.matmul %16, %17, %cst_14 {dimension_numbers = #tpu.dot_dimension_numbers<[1], [0], [0], [1], [0, 0, 1, 1], [], []>} : vector<16x64xbf16>, vector<64x32xbf16>, vector<16x32xf32> -> vector<16x32xf32>
    %c0_15 = arith.constant 0 : index
    %c0_16 = arith.constant 0 : index
    %19 = vector.load %arg7[%c0_15, %c0_16] : memref<1x32xf32, #tpu.memory_space<vmem>>, vector<1x32xf32>
    %20 = vector.broadcast %19 : vector<1x32xf32> to vector<16x32xf32>
    %21 = arith.addf %18, %20 : vector<16x32xf32>
    %cst_17 = arith.constant 0.000000e+00 : f32
    %22 = vector.broadcast %cst_17 : f32 to vector<16x32xf32>
    %23 = arith.maximumf %21, %22 : vector<16x32xf32>
    %24 = arith.truncf %23 : vector<16x32xf32> to vector<16x32xbf16>
    %c0_18 = arith.constant 0 : index
    %c0_19 = arith.constant 0 : index
    %25 = vector.load %arg8[%c0_18, %c0_19] : memref<32x128xbf16, #tpu.memory_space<vmem>>, vector<32x128xbf16>
    %cst_20 = arith.constant dense<0.000000e+00> : vector<16x128xf32>
    %26 = tpu.matmul %24, %25, %cst_20 {dimension_numbers = #tpu.dot_dimension_numbers<[1], [0], [0], [1], [0, 0, 1, 1], [], []>} : vector<16x32xbf16>, vector<32x128xbf16>, vector<16x128xf32> -> vector<16x128xf32>
    %c0_21 = arith.constant 0 : index
    %c0_22 = arith.constant 0 : index
    %27 = vector.load %arg9[%c0_21, %c0_22] : memref<1x128xf32, #tpu.memory_space<vmem>>, vector<1x128xf32>
    %28 = vector.broadcast %27 : vector<1x128xf32> to vector<16x128xf32>
    %29 = arith.addf %26, %28 : vector<16x128xf32>
    %c0_23 = arith.constant 0 : index
    %c0_24 = arith.constant 0 : index
    %30 = vector.load %arg10[%c0_23, %c0_24] : memref<16x128xf32, #tpu.memory_space<vmem>>, vector<16x128xf32>
    tpu.vector_store %arg10[%c0_23, %c0_24], %29 {strides = array<i32>} : memref<16x128xf32, #tpu.memory_space<vmem>>, vector<16x128xf32>,
    return
  }
  func.func @transform_0(%arg0: i32) -> (i32, i32) {
    %c0_i32 = arith.constant 0 : i32
    %c0_i32_0 = arith.constant 0 : i32
    return %arg0, %c0_i32 : i32, i32
  }
  func.func @transform_1(%arg0: i32) -> (i32, i32) {
    %c0_i32 = arith.constant 0 : i32
    %c0_i32_0 = arith.constant 0 : i32
    %c0_i32_1 = arith.constant 0 : i32
    return %c0_i32, %c0_i32_0 : i32, i32
  }
  func.func @transform_2(%arg0: i32) -> (i32, i32) {
    %c0_i32 = arith.constant 0 : i32
    %c0_i32_0 = arith.constant 0 : i32
    %c0_i32_1 = arith.constant 0 : i32
    return %c0_i32, %c0_i32_0 : i32, i32
  }
  func.func @transform_3(%arg0: i32) -> (i32, i32) {
    %c0_i32 = arith.constant 0 : i32
    %c0_i32_0 = arith.constant 0 : i32
    %c0_i32_1 = arith.constant 0 : i32
    return %c0_i32, %c0_i32_0 : i32, i32
  }
  func.func @transform_4(%arg0: i32) -> (i32, i32) {
    %c0_i32 = arith.constant 0 : i32
    %c0_i32_0 = arith.constant 0 : i32
    %c0_i32_1 = arith.constant 0 : i32
    return %c0_i32, %c0_i32_0 : i32, i32
  }
  func.func @transform_5(%arg0: i32) -> (i32, i32) {
    %c0_i32 = arith.constant 0 : i32
    %c0_i32_0 = arith.constant 0 : i32
    %c0_i32_1 = arith.constant 0 : i32
    return %c0_i32, %c0_i32_0 : i32, i32
  }
  func.func @transform_6(%arg0: i32) -> (i32, i32) {
    %c0_i32 = arith.constant 0 : i32
    %c0_i32_0 = arith.constant 0 : i32
    %c0_i32_1 = arith.constant 0 : i32
    return %c0_i32, %c0_i32_0 : i32, i32
  }
  func.func @transform_7(%arg0: i32) -> (i32, i32) {
    %c0_i32 = arith.constant 0 : i32
    %c0_i32_0 = arith.constant 0 : i32
    %c0_i32_1 = arith.constant 0 : i32
    return %c0_i32, %c0_i32_0 : i32, i32
  }
  func.func @transform_8(%arg0: i32) -> (i32, i32) {
    %c0_i32 = arith.constant 0 : i32
    %c0_i32_0 = arith.constant 0 : i32
    %c0_i32_1 = arith.constant 0 : i32
    return %c0_i32, %c0_i32_0 : i32, i32
  }
  func.func @transform_9(%arg0: i32) -> (i32, i32) {
    %c0_i32 = arith.constant 0 : i32
    %c0_i32_0 = arith.constant 0 : i32
    return %arg0, %c0_i32 : i32, i32
  }
}

</mosaic_0001>

<bundles_post_ra>
// kernel: net_forward.1
= control target key start
LH: loop header
LB: loop body
LE: loop exit
PB: predicated region body
PF: predicated region fallthrough
CT: control target
= control target key end

     0   :  { %s866_s30 = smov 0   ;;  %s965_s0 = inlined_call_operand.vmem [shape: bf16[48,128], index: 0, kind: input, shape index: {}]   ;;  %s966_s1 = inlined_call_operand.vmem [shape: bf16[128,128], index: 1, kind: input, shape index: {}]   ;;  %s967_s2 = inlined_call_operand.vmem [shape: f32[1,128], index: 2, kind: input, shape index: {}]   ;;  %s968_s3 = inlined_call_operand.vmem [shape: bf16[128,64], index: 3, kind: input, shape index: {}]   ;;  %s969_s4 = inlined_call_operand.vmem [shape: f32[1,64], index: 4, kind: input, shape index: {}]   ;;  %s970_s5 = inlined_call_operand.vmem [shape: bf16[64,32], index: 5, kind: input, shape index: {}]   ;;  %s971_s6 = inlined_call_operand.vmem [shape: f32[1,32], index: 6, kind: input, shape index: {}]   ;;  %s972_s7 = inlined_call_operand.vmem [shape: bf16[32,128], index: 7, kind: input, shape index: {}]   ;;  %s973_s8 = inlined_call_operand.vmem [shape: f32[1,128], index: 8, kind: input, shape index: {}]   ;;  %s974_s9 = inlined_call_operand.vmem [shape: f32[48,128], index: 9, kind: output, shape index: {}]  }
   0x1 LB: > { %s668_s10 = sadd.s32 4294967295, %s814_s30   ;;  %p672_p0 = scmp.ge.s32.totalorder %s814_s30, 1  ;;  %s814_s30 = sphi %s866_s30, %s19_s30  }
   0x2   : > { %p288_p1 = scmp.lt.s32.totalorder %s814_s30, 4 }
   0x4   : > { %p289_p2 = pnand %p672_p0, %p288_p1 }
   0x5   : > { %s673_s25 = sshll.u32 (!%p289_p2), %s668_s10, 1 }
   0x6   : > { %292 = sbr.rel (%p289_p2) target bundleno = 612 (0x264), region = 56  ;;  %p325_p3 = scmp.lt.s32.totalorder (!%p289_p2), %s673_s25, 5 }
   0xb   : > { %v781_v0 = vld [vmem:[%s966_s1 + $0x38] sm:$0xff]  ;;  %v780_v1 = vld [vmem:[%s966_s1 + $0x30] sm:$0xff]  ;;  %v779_v4 = vld [vmem:[%s966_s1 + $0x28] sm:$0xff]  ;;  %s976_s25 = smov (!%p325_p3, %s673_s25), 5  ;;  %vm551_vm0 = vcmask 523264   ;;  %vm592_vm1 = vcmask 261120  }
   0xc   : > { %413 = vmatpush.bf16.msra.mxu0 %v781_v0  ;;  %v789_v2 = vld [vmem:[%s968_s3 + $0x38] sm:$0xff]  ;;  %v788_v3 = vld [vmem:[%s968_s3 + $0x30] sm:$0xff]  ;;  %v787_v5 = vld [vmem:[%s968_s3 + $0x28] sm:$0xff]  ;;  %s674_s14 = sshll.u32 %s976_s25, 2  ;;  %s676_s28 = sshll.u32 %s976_s25, 3 }
   0xd   : > { %498 = vmatpush.bf16.msra.mxu1 %v789_v2  ;;  %v778_v6 = vld [vmem:[%s966_s1 + $0x20] sm:$0xff]  ;;  %v777_v8 = vld [vmem:[%s966_s1 + $0x18] sm:$0xff]  ;;  %v776_v9 = vld [vmem:[%s966_s1 + $0x10] sm:$0xff]  ;;  %s328_s19 = scalar_lea.vmem %s965_s0, %s674_s14  ;;  %s334_s13 = scalar_lea.vmem %s974_s9, %s676_s28 }
   0xe   : > { %v786_v7 = vld [vmem:[%s968_s3 + $0x20] sm:$0xff]  ;;  %v775_v10 = vld [vmem:[%s966_s1 + $0x8] sm:$0xff]  ;;  %v785_v13 = vld [vmem:[%s968_s3 + $0x18] sm:$0xff] }
   0xf   : > { %v774_v11 = vld [vmem:[%s966_s1] sm:$0xff]  ;;  %v784_v14 = vld [vmem:[%s968_s3 + $0x10] sm:$0xff]  ;;  %v783_v15 = vld [vmem:[%s968_s3 + $0x8] sm:$0xff] }
  0x10   : > { %414 = vmatpush.bf16.msra.mxu0 %v780_v1  ;;  %v773_v12 = vld [vmem:[%s328_s19] sm:$0xff]  ;;  %v793_v25 = vld [vmem:[%s970_s5 + $0x18] sm:$0xff]  ;;  %v792_v26 = vld [vmem:[%s970_s5 + $0x10] sm:$0xff] }
  0x11   : > { %499 = vmatpush.bf16.msra.mxu1 %v788_v3  ;;  %v782_v16 = vld [vmem:[%s968_s3] sm:$0xff]  ;;  %559 = vmatpush.bf16.msra.mxu2 %v793_v25  ;;  %v791_v27 = vld [vmem:[%s970_s5 + $0x8] sm:$0xff] }
  0x12   : > { %v804_v18 = vld [vmem:[%s967_s2] ss:$0 sm:$0xff]  ;;  %v795_v37 = vld [vmem:[%s972_s7 + $0x8] sm:$0xff] }
  0x13   : > { %v790_v28 = vld [vmem:[%s970_s5] sm:$0xff]  ;;  %602 = vmatpush.bf16.msra.mxu3 %v795_v37 }
  0x14   : > { %415 = vmatpush.bf16.msra.mxu0 %v779_v4  ;;  %v805_v30 = vld [vmem:[%s969_s4] ss:$0 sm:$0xff] }
  0x15   : > { %500 = vmatpush.bf16.msra.mxu1 %v787_v5  ;;  %560 = vmatpush.bf16.msra.mxu2 %v792_v26  ;;  %v794_v38 = vld [vmem:[%s972_s7] sm:$0xff] }
  0x16   : > { %v806_v40 = vld [vmem:[%s971_s6] ss:$0 sm:$0xff] }
  0x17   : > { %603 = vmatpush.bf16.msra.mxu3 %v794_v38  ;;  %v807_v47 = vld [vmem:[%s973_s8] ss:$0 sm:$0xff] }
  0x18   : > { %416 = vmatpush.bf16.msra.mxu0 %v778_v6 }
  0x19   : > { %501 = vmatpush.bf16.msra.mxu1 %v786_v7  ;;  %561 = vmatpush.bf16.msra.mxu2 %v791_v27 }
  0x1c   : > { %417 = vmatpush.bf16.msra.mxu0 %v777_v8 }
  0x1d   : > { %502 = vmatpush.bf16.msra.mxu1 %v785_v13  ;;  %562 = vmatpush.bf16.msra.mxu2 %v790_v28 }
  0x20   : > { %418 = vmatpush.bf16.msra.mxu0 %v776_v9 }
  0x21   : > { %503 = vmatpush.bf16.msra.mxu1 %v784_v14 }
  0x24   : > { %419 = vmatpush.bf16.msra.mxu0 %v775_v10 }
  0x25   : > { %504 = vmatpush.bf16.msra.mxu1 %v783_v15 }
  0x28   : > { %420 = vmatpush.bf16.msra.mxu0 %v774_v11 }
  0x29   : > { %505 = vmatpush.bf16.msra.mxu1 %v782_v16 }
  0x2b   : > { %421 = vmatmul.bf16.vlgmr.msra.gmra.mxu0 %v773_v12 }
  0xa8   : > { %v422_v17 = vpop.f32.mrf.mxu0 }
  0xa9   : > { %v423_v19 = vadd.f32 %v804_v18, %v422_v17 }
  0xab   : > { %v427_v22 = vmax.f32 %v423_v19, 0.0 }
  0xb0   : > { %v424_v20 = vpop.f32.mrf.mxu0 }
  0xb1   : > { %v425_v21 = vadd.f32 %v804_v18, %v424_v20 }
  0xb3   : > { %v428_v23 = vmax.f32 %v425_v21, 0.0 }
  0xb5   : > { %v429_v24 = vpack.c.bf16 %v428_v23, %v427_v22 }
  0xb7   : > { %506 = vmatmul.bf16.vlgmr.msra.gmra.mxu1 %v429_v24 }
 0x134   : > { %v507_v29 = vpop.f32.mrf.mxu1 }
 0x135   : > { %v508_v31 = vadd.f32 %v805_v30, %v507_v29 }
 0x137   : > { %v512_v34 = vmax.f32 %v508_v31, 0.0 }
 0x13c   : > { %v509_v32 = vpop.f32.mrf.mxu1 }
 0x13d   : > { %v510_v33 = vadd.f32 %v805_v30, %v509_v32 }
 0x13f   : > { %v513_v35 = vmax.f32 %v510_v33, 0.0 }
 0x141   : > { %v514_v36 = vpack.c.bf16 %v513_v35, %v512_v34 }
 0x143   : > { %761 = vmatmul.msk.bf16.vlgmr.msra.gmra.mxu2 %vm551_vm0, %v514_v36 }
 0x1c6   : > { %v564_v39 = vpop.f32.mrf.mxu2 }
 0x1c7   : > { %v565_v41 = vadd.f32 %v806_v40, %v564_v39 }
 0x1c9   : > { %v569_v44 = vmax.f32 %v565_v41, 0.0 }
 0x1ce   : > { %v566_v42 = vpop.f32.mrf.mxu2 }
 0x1cf   : > { %v567_v43 = vadd.f32 %v806_v40, %v566_v42 }
 0x1d1   : > { %v570_v45 = vmax.f32 %v567_v43, 0.0 }
 0x1d3   : > { %v571_v46 = vpack.c.bf16 %v570_v45, %v569_v44 }
 0x1d5   : > { %770 = vmatmul.msk.bf16.vlgmr.msra.gmra.mxu3 %vm592_vm1, %v571_v46 }
 0x258   : > { %v605_v48 = vpop.f32.mrf.mxu3 }
 0x259   : > { %v606_v49 = vadd.f32 %v807_v47, %v605_v48 }
 0x25b   : > { %610 = vst [vmem:[%s334_s13] sm:$0xff] %v606_v49 }
 0x260   : > { %v607_v50 = vpop.f32.mrf.mxu3 }
 0x261   : > { %v608_v51 = vadd.f32 %v807_v47, %v607_v50 }
 0x263   : > { %611 = vst [vmem:[%s334_s13 + $0x8] sm:$0xff] %v608_v51 }
 0x264 PF: > { %s19_s30 = sadd.s32 1, %s814_s30  }
 0x265   : > { %p16_p4 = scmp.ge.s32.totalorder %s19_s30, 5  }
 0x267   :  { %18 = sbr.rel (!%p16_p4) target bundleno = 1 (0x1), region = 86 }

</bundles_post_ra>
